<compile_context>
chip_gen: v7x
topology: tpu7x:2x2x1
jax: 0.10.0
libtpu: 0.0.40
codegen_flags: <defaults>
</compile_context>

<pallas_src>
import functools

import jax
import jax.numpy as jnp
from jax import lax
from jax.experimental import pallas as pl
from jax.experimental.pallas import tpu as pltpu


def _positional_sum_abs_kernel(t_ref, o_ref, *, lrow, lcol):
    """Fused select(row, col) -> abs -> sum over batch.

    t_ref : (B, TH, TW) window of `target` containing the requested (row, col),
            native dtype, in VMEM.
    o_ref : (1, 1) float32 scalar output in SMEM.
    lrow, lcol are static, tile-local coordinates (row % TH, col % TW).
    """
    # Static row slice: only one sublane-row of the window is pulled into vregs.
    x = t_ref[:, lrow, :].astype(jnp.float32)            # (B, TW), f32 in-register
    cid = lax.broadcasted_iota(jnp.int32, x.shape, 1)     # lane ids
    sel = jnp.where(cid == lcol, jnp.abs(x), 0.0)         # keep only column `col`
    o_ref[0, 0] = jnp.sum(sel)                            # scalar -> SMEM


@functools.partial(jax.jit, static_argnames=("position",))
def positional_loss_forward(target, position="middle"):
    """JAX/Pallas equivalent of positional_loss(position).forward(target).

    target   : (B, H, W) array (any float dtype; accumulation is f32)
    position : 'middle' or a static (row, col) tuple
    returns  : scalar float32 loss = sum_b |target[b, row, col]|
    """
    b, h, w = target.shape
    if position == "middle":
        row, col = h // 2, w // 2
    else:
        row, col = int(position[0]), int(position[1])
        # PyTorch-style negative-index wrapping.
        if row < 0:
            row += h
        if col < 0:
            col += w
    if not (0 <= row < h):
        raise IndexError(f"row index {row} out of range for H={h}")
    if not (0 <= col < w):
        raise IndexError(f"col index {col} out of range for W={w}")

    # TODO(synk): arbitrary user-supplied loss_func callables are not translated; the
    # default sum_abs_loss is fused into the kernel.

    # Window tile: last two block dims must be (8,128)-divisible or equal the full dims.
    th = h if h < 8 else 8
    tw = w if w < 128 else 128
    brow, lrow = divmod(row, th)   # block index / tile-local row
    bcol, lcol = divmod(col, tw)   # block index / tile-local col

    kern = functools.partial(_positional_sum_abs_kernel, lrow=lrow, lcol=lcol)
    out = pl.pallas_call(
        kern,
        grid=(1,),
        out_shape=jax.ShapeDtypeStruct((1, 1), jnp.float32),
        # Only DMA the small window that contains (row, col): HBM traffic is
        # B*th*tw*itemsize regardless of H, W.
        in_specs=[pl.BlockSpec((b, th, tw), lambda i: (0, brow, bcol))],
        # Scalar lands in SMEM — avoids a masked, (8,128)-padded VMEM store.
        out_specs=pl.BlockSpec(memory_space=pltpu.MemorySpace.SMEM),
        compiler_params=pltpu.CompilerParams(dimension_semantics=("arbitrary",)),
    )(target)
    return out[0, 0]


if __name__ == "__main__":
    key = jax.random.PRNGKey(0)

    # target is (batch, H, W) with the channel already selected, per the module docstring.
    B, H, W = 2, 16, 16
    target = jax.random.normal(key, (B, H, W), jnp.float32)

    # Default position='middle'
    loss = jax.block_until_ready(positional_loss_forward(target))
    ref = jnp.sum(jnp.abs(target[:, H // 2, W // 2]))
    assert loss.shape == ()
    assert loss.dtype == jnp.float32
    assert jnp.allclose(loss, ref, atol=1e-5, rtol=1e-5), (loss, ref)

    # Explicit (row, col) position branch
    loss2 = jax.block_until_ready(positional_loss_forward(target, position=(3, 7)))
    ref2 = jnp.sum(jnp.abs(target[:, 3, 7]))
    assert jnp.allclose(loss2, ref2, atol=1e-5, rtol=1e-5), (loss2, ref2)

    # Negative-index wrapping (PyTorch semantics): (-1, -2) == (H-1, W-2)
    loss3 = jax.block_until_ready(positional_loss_forward(target, position=(-1, -2)))
    ref3 = jnp.sum(jnp.abs(target[:, H - 1, W - 2]))
    assert jnp.allclose(loss3, ref3, atol=1e-5, rtol=1e-5), (loss3, ref3)

    # Native-dtype path: no wrapper-side cast; the kernel casts the window in-register.
    target_bf16 = target.astype(jnp.bfloat16)
    loss4 = jax.block_until_ready(positional_loss_forward(target_bf16))
    ref4 = jnp.sum(jnp.abs(target_bf16[:, H // 2, W // 2]).astype(jnp.float32))
    assert loss4.dtype == jnp.float32
    assert jnp.allclose(loss4, ref4, atol=1e-5, rtol=1e-5), (loss4, ref4)

    print("KERNEL_OK")
</pallas_src>

<mosaic_0001>
module attributes {stable_mosaic.version = 11 : i64} {
  func.func @_positional_sum_abs_kernel(%arg0: i32, %arg1: memref<2x8x16xf32, #tpu.memory_space<vmem>>, %arg2: memref<1x1xf32, #tpu.memory_space<smem>>) attributes {dimension_semantics = [#tpu.dimension_semantics<arbitrary>], iteration_bounds = array<i64: 1>, scalar_prefetch = 0 : i64, scratch_operands = 0 : i64, tpu.core_type = #tpu.core_type<tc>, window_params = [{transform_indices = @transform_0, window_bounds = array<i64: 2, 8, 16>}, {transform_indices = @transform_1, window_bounds = array<i64: 1, 1>}]} {
    %c0 = arith.constant 0 : index
    %c0_0 = arith.constant 0 : index
    %c0_1 = arith.constant 0 : index
    %0 = vector.load %arg1[%c0, %c0_0, %c0_1] : memref<2x8x16xf32, #tpu.memory_space<vmem>>, vector<2x1x16xf32>
    %1 = vector.shape_cast %0 : vector<2x1x16xf32> to vector<2x16xf32>
    %2 = tpu.iota {dimensions = array<i32: 1>} : vector<2x16xi32>
    %c8_i32 = arith.constant 8 : i32
    %3 = vector.broadcast %c8_i32 : i32 to vector<2x16xi32>
    %4 = arith.cmpi eq, %2, %3 : vector<2x16xi32>
    %5 = math.absf %1 : vector<2x16xf32>
    %cst = arith.constant 0.000000e+00 : f32
    %6 = vector.broadcast %cst : f32 to vector<2x16xf32>
    %7 = arith.select %4, %5, %6 : vector<2x16xi1>, vector<2x16xf32>
    %8 = vector.shape_cast %7 : vector<2x16xf32> to vector<1x2x16xf32>
    %cst_2 = arith.constant dense<0.000000e+00> : vector<1xf32>
    %9 = vector.multi_reduction <add>, %8, %cst_2 [1, 2] : vector<1x2x16xf32> to vector<1xf32>
    %10 = vector.shape_cast %9 : vector<1xf32> to vector<1x1x1xf32>
    %11 = vector.extract %10[0, 0, 0] : f32 from vector<1x1x1xf32>
    %c0_3 = arith.constant 0 : index
    %c0_4 = arith.constant 0 : index
    %12 = memref.load %arg2[%c0_3, %c0_4] : memref<1x1xf32, #tpu.memory_space<smem>>
    memref.store %11, %arg2[%c0_3, %c0_4] : memref<1x1xf32, #tpu.memory_space<smem>>
    return
  }
  func.func @transform_0(%arg0: i32) -> (i32, i32, i32) {
    %c0_i32 = arith.constant 0 : i32
    %c1_i32 = arith.constant 1 : i32
    %c0_i32_0 = arith.constant 0 : i32
    %c0_i32_1 = arith.constant 0 : i32
    return %c0_i32, %c1_i32, %c0_i32_0 : i32, i32, i32
  }
  func.func @transform_1(%arg0: i32) -> (i32, i32) {
    %c0_i32 = arith.constant 0 : i32
    %c0_i32_0 = arith.constant 0 : i32
    %c0_i32_1 = arith.constant 0 : i32
    return %c0_i32, %c0_i32_0 : i32, i32
  }
}

</mosaic_0001>

<bundles_post_ra>
// kernel: positional_loss_forward.1
= control target key start
LH: loop header
LB: loop body
LE: loop exit
PB: predicated region body
PF: predicated region fallthrough
CT: control target
= control target key end

     0   :  { %6 = vsyncpa [#allocation3], 0  ;;  %s150_s0 = inlined_call_operand.hbm [shape: f32[2,16,16], index: 0, kind: input, shape index: {}]   ;;  %s151_s1 = inlined_call_operand.hbm [shape: f32[1,1], index: 1, kind: output, shape index: {}]  }
   0x1   :  { %7 = vsyncpa [#allocation4], 0  ;;  %s13_s8 = scalar_lea.hbm %s150_s0, 128  ;;  %s111_s9 = smov [#allocation2]  }
   0x2   :  { %s14_s10 = sshll.u32 %s111_s9, 4  ;;  %s96_s13 = scalar_lea.hbm %s150_s0, 384  ;;  %s15_s10 = int_to_ptr.vmem [resolvable:$true] %s14_s10 }
   0x3   :  { %p73_p0 = scmp.ne.s32.totalorder %s13_s8, %s96_s13  ;;  %s74_s16 = scalar_lea.hbm %s150_s0, 512 }
   0x4   :  { %p75_p1 = scmp.lt.u32.totalorder %s13_s8, %s150_s0  ;;  %p76_p2 = scmp.lt.u32.totalorder %s74_s16, %s96_s13 }
   0x5   :  { %p78_p4 = scmp.lt.u32.totalorder %s96_s13, %s13_s8 }
   0x6   :  { %p77_p3 = por %p76_p2, %p75_p1 }
   0x8   :  { %p79_p5 = por %p78_p4, %p77_p3 }
   0xa   :  { %p80_p6 = pnand %p79_p5, %p73_p0 }
   0xc   :  { %83 = shalt.err (!%p80_p6)
}
   0xd   :  { %s84_s19 = scalar_lea.vmem %s15_s10, 256  ;;  %p89_p8 = scmp.lt.s32.totalorder %s15_s10, %s15_s10 }
   0xe   :  { %p85_p7 = scmp.ne.s32.totalorder %s15_s10, %s84_s19  ;;  %p90_p9 = scmp.lt.s32.totalorder %s84_s19, %s84_s19 }
  0x10   :  { %p91_p10 = por %p90_p9, %p89_p8 }
  0x12   :  { %p92_p11 = pnand %p91_p10, %p85_p7 }
  0x14   :  { %95 = shalt.err (!%p92_p11)
}
  0x15   :  { %s112_s20 = smov 256   ;;  %s113_s21 = smov 128  }
  0x16   :  { %s114_s22 = smov 8  }
  0x17   :  { %20 = dma.hbm_to_vmem [thread:$0]  %s13_s8, 256, %s15_s10, [#allocation3], %s112_s20, %s113_s21, %s114_s22  }
  0x18   :  { %107 = dma.done.wait [#allocation3], 256  }
  0x19   :  { %108 = vsyncadd [#allocation3], 4294967040  ;;  %v26_v0 = vlaneseq  ;;  %v24_v2 = vld [vmem:[#allocation2] sm:$0x1]  ;;  %v25_v3 = vld [vmem:[#allocation2 + $0x8] sm:$0x1] }
  0x1a   :  { %v29_v4 = vand.u32 2147483647, %v24_v2  ;;  %v30_v5 = vand.u32 2147483647, %v25_v3  ;;  %vm34_vm0 = vcmask 1041409   ;;  %vm38_vm2 = vcmask 123904  }
  0x1b   :  { %v27_v1 = vand.u32 127, %v26_v0  ;;  %s97_s25 = scalar_lea.hbm %s151_s1, 16 }
  0x1c   :  { %v33_v6 = vrot.slane %v30_v5, 7  ;;  %p98_p12 = scmp.ne.s32.totalorder %s151_s1, %s97_s25  ;;  %p101_p13 = scmp.lt.u32.totalorder %s97_s25, %s151_s1 }
  0x1d   :  { %vm28_vm1 = vcmp.eq.s32.totalorder %v27_v1, 8 }
  0x1e   :  { %v35_v7 = vsel %vm34_vm0, %v33_v6, %v29_v4  ;;  %p103_p0 = pnand %p101_p13, %p98_p12 }
  0x1f   :  { %v37_v8 = vsel %vm28_vm1, %v35_v7, 0.0 }
  0x20   :  { %v39_v9 = vsel %vm38_vm2, %v37_v8, 0.0 }
  0x21   :  { %40 = vadd.xlane.f32.xlu0 %v39_v9 }
  0xae   :  { %v41_v10 = vpop.xlane.xlu0 %40 }
  0xaf   :  { %v42_v11 = vrot.slane %v41_v10, 4 }
  0xb1   :  { %v43_v12 = vadd.f32 %v42_v11, %v41_v10 }
  0xb3   :  { %v44_v13 = vrot.slane %v43_v12, 2 }
  0xb5   :  { %v45_v14 = vadd.f32 %v44_v13, %v43_v12 }
  0xb7   :  { %v46_v15 = vrot.slane %v45_v14, 1 }
  0xb9   :  { %v47_v16 = vadd.f32 %v46_v15, %v45_v14 }
  0xbb   :  { %65 = vpush %v47_v16 }
  0xec   :  { %s66_s0 = spop %65 }
  0xed   :  { %50 = sst [smem:[#allocation5]] %s66_s0 }
  0xee   :  { %106 = shalt.err (!%p103_p0)
}
  0xef   :  { %s115_s30 = smov [#allocation5]  }
  0xf0   :  { %58 = dma.smem_to_hbm %s115_s30, 16, %s151_s1, [#allocation4]  }
  0xf1   :  { %109 = dma.done.wait [#allocation4], 16  }
  0xf2   :  { %110 = vsyncadd [#allocation4], 4294967280 }
  0xf3   :  { %62 = sfence }
  0xf4   :  { %63 = vsyncpa [#allocation3], 1 }
  0xf5   :  { %64 = vsyncpa [#allocation4], 1 }

</bundles_post_ra>
